<compile_context>
chip_gen: v5e
topology: v5e:2x2
jax: 0.10.0
libtpu: 0.0.40
codegen_flags: <defaults>
</compile_context>

<pallas_src>
import jax
import jax.numpy as jnp
from jax.experimental import pallas as pl
from jax.experimental.pallas import tpu as pltpu


def _fused_mlp_kernel(x_ref, w1_ref, b1_ref, w2_ref, b2_ref, w3_ref, b3_ref, o_ref):
    # x_ref: (8, TILE_B) -- batch on lanes.  Weights: (out, in).  Biases: (out, 1) f32.
    xt = x_ref[...]
    cdt = xt.dtype  # MXU-input dtype (f32 or bf16); accumulation is always f32.

    h = jnp.dot(w1_ref[...], xt, preferred_element_type=jnp.float32) + b1_ref[...]
    h = jnp.maximum(h, 0.0).astype(cdt)                    # (16, TILE_B)

    h = jnp.dot(w2_ref[...], h, preferred_element_type=jnp.float32) + b2_ref[...]
    h = jnp.maximum(h, 0.0).astype(cdt)                    # (4, TILE_B)

    h = jnp.dot(w3_ref[...], h, preferred_element_type=jnp.float32) + b3_ref[...]
    # sigmoid(z) == 0.5 * (tanh(z/2) + 1): keeps the transcendental on the EUP.
    o_ref[...] = (0.5 * (jnp.tanh(0.5 * h) + 1.0)).astype(o_ref.dtype)  # (1, TILE_B)


def _cdiv(a: int, b: int) -> int:
    return -(-a // b)


def _round_up(n: int, m: int) -> int:
    return _cdiv(n, m) * m


def _select_tiling(batch: int, max_tile_b: int):
    """Pad batch only to a multiple of 128 and pick an even grid length >= 2."""
    b128 = _round_up(max(batch, 1), 128)
    # Even number of tiles >= 2 so v7x's two TensorCores split the parallel axis.
    n_tiles = max(2, 2 * _cdiv(b128, 2 * max_tile_b))
    tile_b = _round_up(_cdiv(b128, n_tiles), 128)
    b_pad = n_tiles * tile_b
    return tile_b, b_pad, n_tiles


def mlp_forward(x, params, *, max_tile_b: int = 32768, use_bf16: bool = False):
    """x: (B, 8) f32.  params: (w1,b1,w2,b2,w3,b3) with w: (out,in), b: (out,1)."""
    w1, b1, w2, b2, w3, b3 = params
    B, f_in = x.shape
    assert f_in == 8

    tile_b, b_pad, n_tiles = _select_tiling(B, max_tile_b)

    in_dtype = jnp.bfloat16 if use_bf16 else jnp.float32
    # Batch on the lane axis; pad to b_pad (multiple of 128, minimal waste).
    xt = jnp.pad(x.T.astype(in_dtype), ((0, 0), (0, b_pad - B)))
    w1c, w2c, w3c = (w.astype(in_dtype) for w in (w1, w2, w3))
    b1c, b2c, b3c = (b.astype(jnp.float32) for b in (b1, b2, b3))

    itemsize = jnp.dtype(in_dtype).itemsize
    n_param_elems = sum(int(p.size) for p in params)
    cost = pl.CostEstimate(
        flops=2 * b_pad * (8 * 16 + 16 * 4 + 4 * 1),
        transcendentals=b_pad,                               # tanh
        bytes_accessed=b_pad * 8 * itemsize + b_pad * 4 + n_param_elems * 4,
    )

    const = lambda i: (0, 0)
    out_t = pl.pallas_call(
        _fused_mlp_kernel,
        out_shape=jax.ShapeDtypeStruct((1, b_pad), jnp.float32),
        grid=(n_tiles,),
        in_specs=[
            pl.BlockSpec((8, tile_b), lambda i: (0, i)),   # x^T tile (lane-dense)
            pl.BlockSpec((16, 8), const),                  # w1 (VMEM-resident)
            pl.BlockSpec((16, 1), const),                  # b1
            pl.BlockSpec((4, 16), const),                  # w2
            pl.BlockSpec((4, 1), const),                   # b2
            pl.BlockSpec((1, 4), const),                   # w3
            pl.BlockSpec((1, 1), const),                   # b3
        ],
        out_specs=pl.BlockSpec((1, tile_b), lambda i: (0, i)),
        compiler_params=pltpu.CompilerParams(
            dimension_semantics=("parallel",),             # batch tiles across TCs
            # Let XLA fuse the transpose/pad producing x^T into the kernel input
            # (removes an extra HBM pass over x when the fusion applies).
            allow_input_fusion=[True, False, False, False, False, False, False],
            vmem_limit_bytes=32 * 1024 * 1024,             # safe on v5e/v6e/v7x
        ),
        cost_estimate=cost,
    )(xt, w1c, b1c, w2c, b2c, w3c, b3c)

    # Drop padding, return PyTorch-shaped (B, 1).
    return out_t[0, :B].reshape(B, 1)


def init_params(key):
    # torch.nn.Linear init: U(-1/sqrt(fan_in), 1/sqrt(fan_in)); W stored (out, in).
    def linear_init(k, fan_in, fan_out):
        kw, kb = jax.random.split(k)
        bound = 1.0 / jnp.sqrt(fan_in)
        w = jax.random.uniform(kw, (fan_out, fan_in), jnp.float32, -bound, bound)
        b = jax.random.uniform(kb, (fan_out, 1), jnp.float32, -bound, bound)
        return w, b

    k1, k2, k3 = jax.random.split(key, 3)
    w1, b1 = linear_init(k1, 8, 16)
    w2, b2 = linear_init(k2, 16, 4)
    w3, b3 = linear_init(k3, 4, 1)
    return (w1, b1, w2, b2, w3, b3)


def reference_forward(x, params):
    w1, b1, w2, b2, w3, b3 = params
    h = jax.nn.relu(x @ w1.T + b1.T)
    h = jax.nn.relu(h @ w2.T + b2.T)
    return jax.nn.sigmoid(h @ w3.T + b3.T)


if __name__ == "__main__":
    key = jax.random.PRNGKey(0)
    kx1, kx2, kp = jax.random.split(key, 3)
    params = init_params(kp)

    # Small batch (padded up to the minimum 2 x 128-lane tiles).
    x_small = jax.random.normal(kx1, (8, 8), jnp.float32)
    out_small = jax.block_until_ready(mlp_forward(x_small, params))
    ref_small = reference_forward(x_small, params)
    assert out_small.shape == (8, 1)
    assert jnp.allclose(out_small, ref_small, atol=1e-5, rtol=1e-5), "mismatch (small B)"

    # Ragged multi-tile batch (B not a multiple of 128): exercises padding + 2-tile grid.
    x_big = jax.random.normal(kx2, (300, 8), jnp.float32)
    out_big = jax.block_until_ready(mlp_forward(x_big, params))
    ref_big = reference_forward(x_big, params)
    assert out_big.shape == (300, 1)
    assert jnp.allclose(out_big, ref_big, atol=1e-5, rtol=1e-5), "mismatch (ragged B)"

    # bf16-input path (halves the dominant HBM read of x; the v5e optimization).
    out_bf16 = jax.block_until_ready(mlp_forward(x_big, params, use_bf16=True))
    assert out_bf16.shape == (300, 1)
    assert jnp.allclose(out_bf16, ref_big, atol=3e-2, rtol=3e-2), "mismatch (bf16 path)"

    print("KERNEL_OK")
</pallas_src>

<mosaic_0001>
module attributes {stable_mosaic.version = 11 : i64} {
  func.func @_fused_mlp_kernel(%arg0: i32, %arg1: memref<8x128xf32, #tpu.memory_space<vmem>>, %arg2: memref<16x8xf32, #tpu.memory_space<vmem>>, %arg3: memref<16x1xf32, #tpu.memory_space<vmem>>, %arg4: memref<4x16xf32, #tpu.memory_space<vmem>>, %arg5: memref<4x1xf32, #tpu.memory_space<vmem>>, %arg6: memref<1x4xf32, #tpu.memory_space<vmem>>, %arg7: memref<1x1xf32, #tpu.memory_space<vmem>>, %arg8: memref<1x128xf32, #tpu.memory_space<vmem>>) attributes {dimension_semantics = [#tpu.dimension_semantics<parallel>], iteration_bounds = array<i64: 2>, scalar_prefetch = 0 : i64, scratch_operands = 0 : i64, tpu.core_type = #tpu.core_type<tc>, window_params = [{transform_indices = @transform_0, window_bounds = array<i64: 8, 128>}, {pipeline_mode = #tpu.pipeline_mode<synchronous>, transform_indices = @transform_1, window_bounds = array<i64: 16, 8>}, {pipeline_mode = #tpu.pipeline_mode<synchronous>, transform_indices = @transform_2, window_bounds = array<i64: 16, 1>}, {pipeline_mode = #tpu.pipeline_mode<synchronous>, transform_indices = @transform_3, window_bounds = array<i64: 4, 16>}, {pipeline_mode = #tpu.pipeline_mode<synchronous>, transform_indices = @transform_4, window_bounds = array<i64: 4, 1>}, {pipeline_mode = #tpu.pipeline_mode<synchronous>, transform_indices = @transform_5, window_bounds = array<i64: 1, 4>}, {pipeline_mode = #tpu.pipeline_mode<synchronous>, transform_indices = @transform_6, window_bounds = array<i64: 1, 1>}, {transform_indices = @transform_7, window_bounds = array<i64: 1, 128>}]} {
    %c0 = arith.constant 0 : index
    %c0_0 = arith.constant 0 : index
    %0 = vector.load %arg1[%c0, %c0_0] : memref<8x128xf32, #tpu.memory_space<vmem>>, vector<8x128xf32>
    %c0_1 = arith.constant 0 : index
    %c0_2 = arith.constant 0 : index
    %1 = vector.load %arg2[%c0_1, %c0_2] : memref<16x8xf32, #tpu.memory_space<vmem>>, vector<16x8xf32>
    %cst = arith.constant dense<0.000000e+00> : vector<16x128xf32>
    %2 = tpu.matmul %1, %0, %cst {dimension_numbers = #tpu.dot_dimension_numbers<[1], [0], [0], [1], [0, 0, 1, 1], [], []>} : vector<16x8xf32>, vector<8x128xf32>, vector<16x128xf32> -> vector<16x128xf32>
    %c0_3 = arith.constant 0 : index
    %c0_4 = arith.constant 0 : index
    %3 = vector.load %arg3[%c0_3, %c0_4] : memref<16x1xf32, #tpu.memory_space<vmem>>, vector<16x1xf32>
    %4 = vector.broadcast %3 : vector<16x1xf32> to vector<16x128xf32>
    %5 = arith.addf %2, %4 : vector<16x128xf32>
    %cst_5 = arith.constant 0.000000e+00 : f32
    %6 = vector.broadcast %cst_5 : f32 to vector<16x128xf32>
    %7 = arith.maximumf %5, %6 : vector<16x128xf32>
    %c0_6 = arith.constant 0 : index
    %c0_7 = arith.constant 0 : index
    %8 = vector.load %arg4[%c0_6, %c0_7] : memref<4x16xf32, #tpu.memory_space<vmem>>, vector<4x16xf32>
    %cst_8 = arith.constant dense<0.000000e+00> : vector<4x128xf32>
    %9 = tpu.matmul %8, %7, %cst_8 {dimension_numbers = #tpu.dot_dimension_numbers<[1], [0], [0], [1], [0, 0, 1, 1], [], []>} : vector<4x16xf32>, vector<16x128xf32>, vector<4x128xf32> -> vector<4x128xf32>
    %c0_9 = arith.constant 0 : index
    %c0_10 = arith.constant 0 : index
    %10 = vector.load %arg5[%c0_9, %c0_10] : memref<4x1xf32, #tpu.memory_space<vmem>>, vector<4x1xf32>
    %11 = vector.broadcast %10 : vector<4x1xf32> to vector<4x128xf32>
    %12 = arith.addf %9, %11 : vector<4x128xf32>
    %cst_11 = arith.constant 0.000000e+00 : f32
    %13 = vector.broadcast %cst_11 : f32 to vector<4x128xf32>
    %14 = arith.maximumf %12, %13 : vector<4x128xf32>
    %c0_12 = arith.constant 0 : index
    %c0_13 = arith.constant 0 : index
    %15 = vector.load %arg6[%c0_12, %c0_13] : memref<1x4xf32, #tpu.memory_space<vmem>>, vector<1x4xf32>
    %cst_14 = arith.constant dense<0.000000e+00> : vector<1x128xf32>
    %16 = tpu.matmul %15, %14, %cst_14 {dimension_numbers = #tpu.dot_dimension_numbers<[1], [0], [0], [1], [0, 0, 1, 1], [], []>} : vector<1x4xf32>, vector<4x128xf32>, vector<1x128xf32> -> vector<1x128xf32>
    %c0_15 = arith.constant 0 : index
    %c0_16 = arith.constant 0 : index
    %17 = vector.load %arg7[%c0_15, %c0_16] : memref<1x1xf32, #tpu.memory_space<vmem>>, vector<1x1xf32>
    %18 = vector.broadcast %17 : vector<1x1xf32> to vector<1x128xf32>
    %19 = arith.addf %16, %18 : vector<1x128xf32>
    %cst_17 = arith.constant 5.000000e-01 : f32
    %20 = vector.broadcast %cst_17 : f32 to vector<1x128xf32>
    %21 = arith.mulf %20, %19 : vector<1x128xf32>
    %22 = math.tanh %21 : vector<1x128xf32>
    %cst_18 = arith.constant 1.000000e+00 : f32
    %23 = vector.broadcast %cst_18 : f32 to vector<1x128xf32>
    %24 = arith.addf %22, %23 : vector<1x128xf32>
    %cst_19 = arith.constant 5.000000e-01 : f32
    %25 = vector.broadcast %cst_19 : f32 to vector<1x128xf32>
    %26 = arith.mulf %25, %24 : vector<1x128xf32>
    %c0_20 = arith.constant 0 : index
    %c0_21 = arith.constant 0 : index
    %27 = vector.load %arg8[%c0_20, %c0_21] : memref<1x128xf32, #tpu.memory_space<vmem>>, vector<1x128xf32>
    tpu.vector_store %arg8[%c0_20, %c0_21], %26 {strides = array<i32>} : memref<1x128xf32, #tpu.memory_space<vmem>>, vector<1x128xf32>,
    return
  }
  func.func @transform_0(%arg0: i32) -> (i32, i32) {
    %c0_i32 = arith.constant 0 : i32
    %c0_i32_0 = arith.constant 0 : i32
    return %c0_i32, %arg0 : i32, i32
  }
  func.func @transform_1(%arg0: i32) -> (i32, i32) {
    %c0_i32 = arith.constant 0 : i32
    %c0_i32_0 = arith.constant 0 : i32
    %c0_i32_1 = arith.constant 0 : i32
    return %c0_i32, %c0_i32_0 : i32, i32
  }
  func.func @transform_2(%arg0: i32) -> (i32, i32) {
    %c0_i32 = arith.constant 0 : i32
    %c0_i32_0 = arith.constant 0 : i32
    %c0_i32_1 = arith.constant 0 : i32
    return %c0_i32, %c0_i32_0 : i32, i32
  }
  func.func @transform_3(%arg0: i32) -> (i32, i32) {
    %c0_i32 = arith.constant 0 : i32
    %c0_i32_0 = arith.constant 0 : i32
    %c0_i32_1 = arith.constant 0 : i32
    return %c0_i32, %c0_i32_0 : i32, i32
  }
  func.func @transform_4(%arg0: i32) -> (i32, i32) {
    %c0_i32 = arith.constant 0 : i32
    %c0_i32_0 = arith.constant 0 : i32
    %c0_i32_1 = arith.constant 0 : i32
    return %c0_i32, %c0_i32_0 : i32, i32
  }
  func.func @transform_5(%arg0: i32) -> (i32, i32) {
    %c0_i32 = arith.constant 0 : i32
    %c0_i32_0 = arith.constant 0 : i32
    %c0_i32_1 = arith.constant 0 : i32
    return %c0_i32, %c0_i32_0 : i32, i32
  }
  func.func @transform_6(%arg0: i32) -> (i32, i32) {
    %c0_i32 = arith.constant 0 : i32
    %c0_i32_0 = arith.constant 0 : i32
    %c0_i32_1 = arith.constant 0 : i32
    return %c0_i32, %c0_i32_0 : i32, i32
  }
  func.func @transform_7(%arg0: i32) -> (i32, i32) {
    %c0_i32 = arith.constant 0 : i32
    %c0_i32_0 = arith.constant 0 : i32
    return %c0_i32, %arg0 : i32, i32
  }
}

</mosaic_0001>

<bundles_post_ra>
// kernel: tpu_custom_call.1
= control target key start
LH: loop header
LB: loop body
LE: loop exit
PB: predicated region body
PF: predicated region fallthrough
CT: control target
= control target key end

     0   :  { %s734_s0 = inlined_call_operand.vmem [shape: f32[8,256], index: 0, kind: input, shape index: {}]   ;;  %s735_s1 = inlined_call_operand.vmem [shape: f32[16,8], index: 1, kind: input, shape index: {}]   ;;  %s736_s2 = inlined_call_operand.vmem [shape: f32[16,1], index: 2, kind: input, shape index: {}]   ;;  %s737_s3 = inlined_call_operand.vmem [shape: f32[4,16], index: 3, kind: input, shape index: {}]   ;;  %s738_s4 = inlined_call_operand.vmem [shape: f32[4,1], index: 4, kind: input, shape index: {}]   ;;  %s739_s5 = inlined_call_operand.vmem [shape: f32[1,4], index: 5, kind: input, shape index: {}]   ;;  %s740_s6 = inlined_call_operand.<no memory space> [shape: f32[1,1], index: 6, kind: input, shape index: {}]   ;;  %s741_s7 = inlined_call_operand.hbm [shape: f32[1,256], index: 7, kind: output, shape index: {}]  }
   0x1   :  { %v12_v0 = vstv %s740_s6 }
   0x2   :  { %13 = vst [vmem:[#allocation2] sm:$0x1] %v12_v0 }
   0x3   :  { %14 = vsyncpa [#allocation4], 0 }
   0x4   :  { %16 = vsyncpa [#allocation4 + $0x1], 0  ;;  %s628_s26 = smov 0   ;;  %s630_s27 = smov 0  }
   0x5   :  { %s632_s28 = smov 0   ;;  %s634_s29 = smov 0  }
   0x6 LB: > { %s649_s6 = sadd.s32 4294967295, %s582_s29   ;;  %s463_s30 = sadd.s32 4294967294, %s582_s29   ;;  %s582_s29 = sphi %s634_s29, %s747_s29   ;;  %s578_s28 = sphi %s632_s28, %s746_s28   ;;  %s574_s27 = sphi %s630_s27, %s745_s27   ;;  %s570_s26 = sphi %s628_s26, %s744_s26  }
   0x7   : > { %s653_s8 = sadd.s32 1, %s582_s29   ;;  %s181_s9 = sadd.s32 1, %s578_s28 }
   0x8   : > { %s178_s10 = ssub.s32 %s582_s29, %s653_s8  ;;  %p191_p0 = scmp.ne.s32.totalorder %s578_s28, %s574_s27 }
   0x9   : > { %p179_p1 = scmp.eq.s32.totalorder %s178_s10, 0  ;;  %p192_p2 = scmp.eq.s32.totalorder %s649_s6, 1 }
   0xa   : > { %p197_p3 = scmp.ne.s32.totalorder %s574_s27, %s570_s26  ;;  %p198_p4 = scmp.eq.s32.totalorder %s463_s30, 1 }
   0xb   : > { %s664_s11 = scalar_select %p179_p1, %s578_s28, %s181_s9  }
   0xc   : > { %p666_p5 = por %p192_p2, %p191_p0  ;;  %p670_p6 = por %p198_p4, %p197_p3 }
   0xd   : > { %p466_p7 = scmp.ge.s32.totalorder %s582_s29, 1  ;;  %p241_p8 = scmp.lt.s32.totalorder %s582_s29, 3 }
   0xf   : > { %p242_p9 = pnand %p466_p7, %p241_p8 }
  0x10   : > { %p271_p10 = scmp.lt.s32.totalorder (!%p242_p9), %s649_s6, 1  ;;  %s269_s18 = sand.u32 (!%p242_p9), 1, %s574_s27  }
  0x11   : > { %245 = sbr.rel (%p242_p9) target bundleno = 448 (0x1c0), region = 48  ;;  %s404_s21 = scalar_lea.hbm (!%p242_p9), %s741_s7, %s649_s6 }
  0x12   : > { %s270_s22 = scalar_lea.vmem (!%p242_p9), [#allocation3], %s269_s18  ;;  %s408_s24 = sshll.u32 (!%p242_p9), %s404_s21, 4  ;;  %s409_s24 = int_to_ptr.hbm [resolvable:$true] %s408_s24 }
  0x13   : > { %s406_s23 = sshll.u32 (!%p242_p9), %s270_s22, 4  ;;  %s396_s25 = scalar_lea.sflag (!%p242_p9), [#allocation4], %s269_s18  ;;  %s407_s23 = int_to_ptr.vmem [resolvable:$true] %s406_s23 }
  0x14   : > { %s534_s30 = sshra.s32 (!%p242_p9), %s409_s24, 4  ;;  %s535_s30 = int_to_ptr.hbm [resolvable:$true] %s534_s30 }
  0x15   : > { %s536_s9 = scalar_lea.hbm (!%p242_p9), %s535_s30, 1  ;;  %p541_p0 = scmp.lt.s32.totalorder (!%p242_p9), %s535_s30, %s741_s7 }
  0x16   : > { %v279_v1 = vld [vmem:[%s736_s2 + $0x8] sm:$0xff]  ;;  %v584_v2 = vmov 0   ;;  %s272_s16 = scalar_select %p271_p10, %s649_s6, 1  ;;  %v276_v3 = vld [vmem:[%s735_s1] sm:$0xff]  ;;  %vm290_vm0 = vcmask 64512   ;;  %vm329_vm1 = vcmask 130048  }
  0x17   : > { %516 = vset.pattern.permute.xlu0 %v584_v2  ;;  %517 = vset.pattern.permute.xlu1 %v584_v2  ;;  %v277_v4 = vld [vmem:[%s735_s1 + $0x8] sm:$0xff]  ;;  %v278_v6 = vld [vmem:[%s736_s2] sm:$0xff]  ;;  %vm366_vm2 = vcmask 1043456   ;;  %vm362_vm3 = vcmask 31744   ;;  %p537_p11 = scmp.ne.s32.totalorder %s535_s30, %s536_s9  ;;  %s540_s6 = scalar_lea.hbm %s741_s7, 2 }
  0x18   : > { %287 = vperm.xlu0 %516, %v279_v1   ;;  %s467_s17 = sshll.u32 %s272_s16, 3  ;;  %v323_v7 = vld [vmem:[%s738_s4] sm:$0xf]  ;;  %p542_p1 = scmp.lt.s32.totalorder %s540_s6, %s536_s9 }
  0x19   : > { %s274_s20 = scalar_lea.vmem %s734_s0, %s467_s17  ;;  %326 = vperm.xlu1 %517, %v323_v7   ;;  %v355_v8 = vld [vmem:[#allocation2] sm:$0x1]  ;;  %p538_p12 = pnand %p537_p11, %p666_p5 }
  0x1a   : > { %v275_v5 = vld [vmem:[%s274_s20] sm:$0xff]  ;;  %p543_p2 = por %p542_p1, %p541_p0 }
  0x1b   : > { %312 = vmatpush.msra.mxu0 %v275_v5  ;;  %475 = vmatpush.msra.mxu3 %v275_v5  ;;  %v322_v17 = vld [vmem:[%s737_s3] sm:$0xf]  ;;  %p539_p13 = pneg %p538_p12 }
  0x1c   : > { %468 = vmatmul.msk.f32.vlgmr.msra.gmra.mxu0 %vm290_vm0, %v276_v3  ;;  %469 = vmatmul.msk.f32.vlgmr.msra.gmra.mxu3 %vm290_vm0, %v277_v4  ;;  %v354_v22 = vld [vmem:[%s739_s5] sm:$0x1] }
  0x1d   : > { %p544_p3 = pnand %p543_p2, %p539_p13 }
  0x20   : > { %282 = vperm.xlu0 %516, %v278_v6  }
  0x21   : > { %358 = vperm.xlu1 %517, %v355_v8  }
  0x8a   : > { %v288_v9 = vpop.permute.xlu0 %287 }
  0x8b   : > { %v327_v18 = vpop.permute.xlu1 %326 }
  0x92   : > { %v283_v10 = vpop.permute.xlu0 %282 }
  0x93   : > { %v359_v23 = vpop.permute.xlu1 %358 }
  0x94   : > { %v361_v24 = vperm.slane %v359_v23, 0 }
  0x99   : > { %v314_v11 = vpop.f32.mrf.mxu0 }
  0x9a   : > { %v315_v13 = vadd.f32 %v314_v11, %v283_v10 }
  0x9c   : > { %v320_v16 = vmax.f32 %v315_v13, 0.0 }
  0x9f   : > { %v317_v12 = vpop.f32.mrf.mxu3 }
  0xa0   : > { %v318_v14 = vadd.f32 %v317_v12, %v288_v9 }
  0xa2   : > { %v321_v15 = vmax.f32 %v318_v14, 0.0 }
  0xa4   : > { %347 = vmatpush.msra.mxu1 %v321_v15 }
  0xa6   : > { %348 = vmatpush.msra.mxu1 %v320_v16 }
  0xa7   : > { %470 = vmatmul.msk.f32.vlgmr.msra.gmra.mxu1 %vm329_vm1, %v322_v17 }
 0x124   : > { %v350_v19 = vpop.f32.mrf.mxu1 }
 0x125   : > { %v351_v20 = vadd.f32 %v350_v19, %v327_v18 }
 0x127   : > { %v353_v21 = vmax.f32 %v351_v20, 0.0 }
 0x129   : > { %471 = vmatpush.msk.msra.mxu2 %vm366_vm2, %v353_v21 }
 0x12a   : > { %472 = vmatmul.msk.f32.vlgmr.msra.gmra.mxu2 %vm362_vm3, %v354_v22 }
 0x1ad   : > { %v387_v25 = vpop.f32.mrf.mxu2 }
 0x1ae   : > { %v388_v26 = vadd.f32 %v387_v25, %v361_v24 }
 0x1b0   : > { %v390_v27 = vmul.f32 0.5, %v388_v26 }
 0x1b2   : > { %518 = vtanh.f32 %v390_v27 }
 0x1b8   : > { %v519_v28 = vpop.eup %518 }
 0x1b9   : > { %v392_v29 = vadd.f32 1.0, %v519_v28 }
 0x1bb   : > { %v393_v30 = vmul.f32 0.5, %v392_v29 }
 0x1bd   : > { %394 = vst [vmem:[%s270_s22] sm:$0x1] %v393_v30 }
 0x1be   : > { %547 = shalt.err (!%p544_p3)
}
 0x1bf   : > { %476 = dma.vmem_to_hbm [thread:$0]  (%p666_p5), %s407_s23, 16, %s409_s24, %s396_s25  }
 0x1c0 PF: > { %p482_p4 = scmp.ge.s32.totalorder %s582_s29, 2  ;;  %s420_s17 = sand.u32 1, %s570_s26  }
 0x1c1   : > { %s421_s18 = scalar_lea.sflag [#allocation4], %s420_s17 }
 0x1c2   : > { %p479_p7 = pnand %p482_p4, %p670_p6 }
 0x1c4   : > { %p480_p8 = pneg %p479_p7 }
 0x1c6   : > { %565 = dma.done.wait (%p480_p8), %s421_s18, 16  }
 0x1c7   : > { %567 = vsyncadd (%p480_p8), %s421_s18, 4294967280  ;;  %p19_p9 = scmp.ge.s32.totalorder %s653_s8, 4   ;;  %s744_s26 = smov %s574_s27 }
 0x1c8   : > { %s745_s27 = smov %s578_s28  ;;  %s746_s28 = smov %s664_s11 }
 0x1c9   : > { %s747_s29 = smov %s653_s8  ;;  %21 = sbr.rel (!%p19_p9) target bundleno = 6 (0x6), region = 83 }
 0x1ce   :  { %426 = vsyncpa [#allocation4], 1 }
 0x1cf   :  { %428 = vsyncpa [#allocation4 + $0x1], 1 }

</bundles_post_ra>
